<compile_context>
chip_gen: v6e
topology: v6e:2x2x1
jax: 0.10.0
libtpu: 0.0.40
codegen_flags: <defaults>
</compile_context>

<pallas_src>
import jax
import jax.numpy as jnp
from jax import lax
from jax.experimental import pallas as pl
from jax.experimental.pallas import tpu as pltpu
import numpy as np

EPS = 1e-5   # torch BatchNorm2d default
EXP = 4      # rank_pool.exp


# ----------------------------- Pallas kernel --------------------------------
def rank_pool_kernel(x_ref, w1_ref, w2_ref, w3_ref, sel_ref, selt_ref,
                     s1_ref, b1_ref, s2_ref, b2_ref, s3_ref, b3_ref,
                     out_ref):
    # p1: stride-2 3x3 grouped conv as ONE matmul (fused taps), bn1, relu.
    h1 = jnp.dot(w1_ref[...], x_ref[...],
                 preferred_element_type=jnp.float32)           # (Cexp, M)
    h1 = jnp.maximum(h1 * s1_ref[...] + b1_ref[...], 0.0)

    # p2: 1x1 conv == matmul, bn2.
    h2 = jnp.dot(w2_ref[...], h1,
                 preferred_element_type=jnp.float32)           # (Cout, M)
    h2 = h2 * s2_ref[...] + b2_ref[...]

    # p3: depthwise full-spatial conv -> per-(image, channel) scalar, bn3, sig.
    # Segmented lane reduction done on the MXU via the 0/1 segment matrix.
    z = jnp.dot(h2 * w3_ref[...], sel_ref[...],
                preferred_element_type=jnp.float32)            # (Cout, Nb)
    y = jax.nn.sigmoid(z * s3_ref[...] + b3_ref[...])          # (Cout, Nb)

    # Broadcast the gate back over each image's spatial lanes, gate + relu.
    gate = jnp.dot(y, selt_ref[...],
                   preferred_element_type=jnp.float32)         # (Cout, M)
    out_ref[...] = jnp.maximum(h2 * gate, 0.0).astype(out_ref.dtype)


# ------------------------------ wrapper --------------------------------------
def _pick_block_batch(n, p):
    """Smallest divisor of n giving >= 128 lanes per block (else all of n)."""
    for nb in range(1, n + 1):
        if n % nb == 0 and nb * p >= 128:
            return nb
    return n


def rank_pool_forward(x_nchw, params):
    N, Cin, H, W = x_nchw.shape
    w1, w2, w3 = params["w1"], params["w2"], params["w3"]
    Cexp = w1.shape[0]                 # out_planes * 4
    Cout = w2.shape[0]                 # out_planes
    E = Cexp // Cin
    size = w3.shape[-1]
    Ho, Wo = H // 2, W // 2
    P = Ho * Wo
    assert (Ho, Wo) == (size, size), "p3 kernel must cover the full feature map"

    Nb = _pick_block_batch(N, P)       # images per grid step (M = Nb*P lanes)
    Mb = Nb * P
    G = N // Nb

    # folded BatchNorm scale/bias (inference form), as per-channel columns
    def fold(bn):
        g, b, m, v = bn
        s = g / jnp.sqrt(v + EPS)
        return s.reshape(-1, 1), (b - m * s).reshape(-1, 1)
    s1, b1 = fold(params["bn1"])
    s2, b2 = fold(params["bn2"])
    s3, b3 = fold(params["bn3"])

    # p1 grouped 3x3 weight -> fused dense block-diagonal (Cexp, 9*Cin)
    #   rows: co = ci*E + e ; cols: tap*Cin + ci'
    b9 = w1.reshape(Cin, E, 9)
    w1f = (b9[:, :, :, None] *
           jnp.eye(Cin, dtype=w1.dtype)[:, None, None, :]).reshape(Cexp, 9 * Cin)
    w2f = w2[:, :, 0, 0]                                   # (Cout, Cexp)
    w3b = jnp.tile(w3.reshape(Cout, P), (1, Nb))           # (Cout, Mb)

    # 0/1 segment matrices: per-image lane sum / per-image lane broadcast
    sel = jnp.repeat(jnp.eye(Nb, dtype=x_nchw.dtype), P, axis=0)   # (Mb, Nb)
    selT = sel.T                                                   # (Nb, Mb)

    # im2col in the XLA wrapper (mem-bound there, keeps relayouts off the TC):
    # one (9*Cin, N*Ho*Wo) slab, column m = n*P + h*Wo + w, row = tap*Cin + ci
    xp = jnp.pad(x_nchw, ((0, 0), (0, 0), (1, 1), (1, 1)))
    taps = [xp[:, :, kh:kh + 2 * Ho:2, kw:kw + 2 * Wo:2]    # (N, Cin, Ho, Wo)
            for kh in range(3) for kw in range(3)]
    xt = jnp.stack(taps, axis=0)                            # (9, N, Cin, Ho, Wo)
    xt = xt.transpose(0, 2, 1, 3, 4).reshape(9 * Cin, N * P)

    def const_spec(shape):
        # grid-invariant operands: constant index map -> no re-fetch per step
        return pl.BlockSpec(shape, lambda g: (0, 0))

    out_flat = pl.pallas_call(
        rank_pool_kernel,
        out_shape=jax.ShapeDtypeStruct((Cout, N * P), x_nchw.dtype),
        grid=(G,),
        in_specs=[
            pl.BlockSpec((9 * Cin, Mb), lambda g: (0, g)),  # activation slab
            const_spec((Cexp, 9 * Cin)),                    # w1 fused
            const_spec((Cout, Cexp)),                       # w2
            const_spec((Cout, Mb)),                         # w3 (tiled per image)
            const_spec((Mb, Nb)),                           # segment sum matrix
            const_spec((Nb, Mb)),                           # segment bcast matrix
            const_spec((Cexp, 1)), const_spec((Cexp, 1)),   # bn1 scale/bias
            const_spec((Cout, 1)), const_spec((Cout, 1)),   # bn2 scale/bias
            const_spec((Cout, 1)), const_spec((Cout, 1)),   # bn3 scale/bias
        ],
        out_specs=pl.BlockSpec((Cout, Mb), lambda g: (0, g)),   # lane-dense out
        compiler_params=pltpu.CompilerParams(
            dimension_semantics=("parallel",)),
    )(xt, w1f, w2f, w3b, sel, selT, s1, b1, s2, b2, s3, b3)

    # (Cout, N*Ho*Wo) -> NCHW
    return out_flat.reshape(Cout, N, Ho, Wo).transpose(1, 0, 2, 3)


# --------------------------- pure-JAX reference ------------------------------
def rank_pool_reference(x, params):
    def bn(t, p):
        g, b, m, v = p
        s = (g / jnp.sqrt(v + EPS))
        return (t - m[None, :, None, None]) * s[None, :, None, None] \
            + b[None, :, None, None]
    dn = ("NCHW", "OIHW", "NCHW")
    hp = lax.Precision.HIGHEST
    Cin = x.shape[1]
    Cout = params["w2"].shape[0]
    o = lax.conv_general_dilated(x, params["w1"], (2, 2), ((1, 1), (1, 1)),
                                 dimension_numbers=dn, feature_group_count=Cin,
                                 precision=hp)
    o = jax.nn.relu(bn(o, params["bn1"]))
    o = lax.conv_general_dilated(o, params["w2"], (1, 1), ((0, 0), (0, 0)),
                                 dimension_numbers=dn, precision=hp)
    o = bn(o, params["bn2"])
    y = lax.conv_general_dilated(o, params["w3"], (1, 1), ((0, 0), (0, 0)),
                                 dimension_numbers=dn, feature_group_count=Cout,
                                 precision=hp)
    y = jax.nn.sigmoid(bn(y, params["bn3"]))
    out = o * y.reshape(x.shape[0], -1, 1, 1)
    return jax.nn.relu(out)


# ------------------------------ params ---------------------------------------
def make_params(key, in_planes, out_planes, size):
    Cexp = out_planes * EXP
    ks = jax.random.split(key, 6)

    def bn_params(k, c):
        k1, k2, k3, k4 = jax.random.split(k, 4)
        gamma = 1.0 + 0.1 * jax.random.normal(k1, (c,), jnp.float32)
        beta = 0.1 * jax.random.normal(k2, (c,), jnp.float32)
        mean = 0.1 * jax.random.normal(k3, (c,), jnp.float32)
        var = 0.8 + 0.4 * jax.random.uniform(k4, (c,), jnp.float32)
        return gamma, beta, mean, var

    return {
        "w1": jax.random.normal(ks[0], (Cexp, 1, 3, 3), jnp.float32) / 3.0,
        "w2": jax.random.normal(ks[1], (out_planes, Cexp, 1, 1), jnp.float32) / 4.0,
        "w3": jax.random.normal(ks[2], (out_planes, 1, size, size), jnp.float32) / 8.0,
        "bn1": bn_params(ks[3], Cexp),
        "bn2": bn_params(ks[4], out_planes),
        "bn3": bn_params(ks[5], out_planes),
    }


if __name__ == "__main__":
    in_planes, out_planes = 4, 4
    N, H, W = 2, 16, 16
    size = H // 2                         # p3 kernel covers the post-stride map

    key = jax.random.PRNGKey(0)
    kx, kp = jax.random.split(key)
    x = jax.random.normal(kx, (N, in_planes, H, W), jnp.float32)
    params = make_params(kp, in_planes, out_planes, size)

    out = jax.block_until_ready(rank_pool_forward(x, params))

    ref = jax.block_until_ready(rank_pool_reference(x, params))
    assert out.shape == ref.shape == (N, out_planes, H // 2, W // 2)
    np.testing.assert_allclose(np.asarray(out), np.asarray(ref),
                               rtol=3e-2, atol=3e-2)
    print("KERNEL_OK")
</pallas_src>

<mosaic_0001>
module attributes {stable_mosaic.version = 11 : i64} {
  func.func @rank_pool_kernel(%arg0: i32, %arg1: memref<36x128xf32, #tpu.memory_space<vmem>>, %arg2: memref<16x36xf32, #tpu.memory_space<vmem>>, %arg3: memref<4x16xf32, #tpu.memory_space<vmem>>, %arg4: memref<4x128xf32, #tpu.memory_space<vmem>>, %arg5: memref<128x2xf32, #tpu.memory_space<vmem>>, %arg6: memref<2x128xf32, #tpu.memory_space<vmem>>, %arg7: memref<16x1xf32, #tpu.memory_space<vmem>>, %arg8: memref<16x1xf32, #tpu.memory_space<vmem>>, %arg9: memref<4x1xf32, #tpu.memory_space<vmem>>, %arg10: memref<4x1xf32, #tpu.memory_space<vmem>>, %arg11: memref<4x1xf32, #tpu.memory_space<vmem>>, %arg12: memref<4x1xf32, #tpu.memory_space<vmem>>, %arg13: memref<4x128xf32, #tpu.memory_space<vmem>>) attributes {dimension_semantics = [#tpu.dimension_semantics<parallel>], iteration_bounds = array<i64: 1>, scalar_prefetch = 0 : i64, scratch_operands = 0 : i64, tpu.core_type = #tpu.core_type<tc>, window_params = [{transform_indices = @transform_0, window_bounds = array<i64: 36, 128>}, {pipeline_mode = #tpu.pipeline_mode<synchronous>, transform_indices = @transform_1, window_bounds = array<i64: 16, 36>}, {pipeline_mode = #tpu.pipeline_mode<synchronous>, transform_indices = @transform_2, window_bounds = array<i64: 4, 16>}, {pipeline_mode = #tpu.pipeline_mode<synchronous>, transform_indices = @transform_3, window_bounds = array<i64: 4, 128>}, {pipeline_mode = #tpu.pipeline_mode<synchronous>, transform_indices = @transform_4, window_bounds = array<i64: 128, 2>}, {pipeline_mode = #tpu.pipeline_mode<synchronous>, transform_indices = @transform_5, window_bounds = array<i64: 2, 128>}, {pipeline_mode = #tpu.pipeline_mode<synchronous>, transform_indices = @transform_6, window_bounds = array<i64: 16, 1>}, {pipeline_mode = #tpu.pipeline_mode<synchronous>, transform_indices = @transform_7, window_bounds = array<i64: 16, 1>}, {pipeline_mode = #tpu.pipeline_mode<synchronous>, transform_indices = @transform_8, window_bounds = array<i64: 4, 1>}, {pipeline_mode = #tpu.pipeline_mode<synchronous>, transform_indices = @transform_9, window_bounds = array<i64: 4, 1>}, {pipeline_mode = #tpu.pipeline_mode<synchronous>, transform_indices = @transform_10, window_bounds = array<i64: 4, 1>}, {pipeline_mode = #tpu.pipeline_mode<synchronous>, transform_indices = @transform_11, window_bounds = array<i64: 4, 1>}, {transform_indices = @transform_12, window_bounds = array<i64: 4, 128>}]} {
    %c0 = arith.constant 0 : index
    %c0_0 = arith.constant 0 : index
    %0 = vector.load %arg2[%c0, %c0_0] : memref<16x36xf32, #tpu.memory_space<vmem>>, vector<16x36xf32>
    %c0_1 = arith.constant 0 : index
    %c0_2 = arith.constant 0 : index
    %1 = vector.load %arg1[%c0_1, %c0_2] : memref<36x128xf32, #tpu.memory_space<vmem>>, vector<36x128xf32>
    %cst = arith.constant dense<0.000000e+00> : vector<16x128xf32>
    %2 = tpu.matmul %0, %1, %cst {dimension_numbers = #tpu.dot_dimension_numbers<[1], [0], [0], [1], [0, 0, 1, 1], [], []>} : vector<16x36xf32>, vector<36x128xf32>, vector<16x128xf32> -> vector<16x128xf32>
    %c0_3 = arith.constant 0 : index
    %c0_4 = arith.constant 0 : index
    %3 = vector.load %arg7[%c0_3, %c0_4] : memref<16x1xf32, #tpu.memory_space<vmem>>, vector<16x1xf32>
    %4 = vector.broadcast %3 : vector<16x1xf32> to vector<16x128xf32>
    %5 = arith.mulf %2, %4 : vector<16x128xf32>
    %c0_5 = arith.constant 0 : index
    %c0_6 = arith.constant 0 : index
    %6 = vector.load %arg8[%c0_5, %c0_6] : memref<16x1xf32, #tpu.memory_space<vmem>>, vector<16x1xf32>
    %7 = vector.broadcast %6 : vector<16x1xf32> to vector<16x128xf32>
    %8 = arith.addf %5, %7 : vector<16x128xf32>
    %cst_7 = arith.constant 0.000000e+00 : f32
    %9 = vector.broadcast %cst_7 : f32 to vector<16x128xf32>
    %10 = arith.maximumf %8, %9 : vector<16x128xf32>
    %c0_8 = arith.constant 0 : index
    %c0_9 = arith.constant 0 : index
    %11 = vector.load %arg3[%c0_8, %c0_9] : memref<4x16xf32, #tpu.memory_space<vmem>>, vector<4x16xf32>
    %cst_10 = arith.constant dense<0.000000e+00> : vector<4x128xf32>
    %12 = tpu.matmul %11, %10, %cst_10 {dimension_numbers = #tpu.dot_dimension_numbers<[1], [0], [0], [1], [0, 0, 1, 1], [], []>} : vector<4x16xf32>, vector<16x128xf32>, vector<4x128xf32> -> vector<4x128xf32>
    %c0_11 = arith.constant 0 : index
    %c0_12 = arith.constant 0 : index
    %13 = vector.load %arg9[%c0_11, %c0_12] : memref<4x1xf32, #tpu.memory_space<vmem>>, vector<4x1xf32>
    %14 = vector.broadcast %13 : vector<4x1xf32> to vector<4x128xf32>
    %15 = arith.mulf %12, %14 : vector<4x128xf32>
    %c0_13 = arith.constant 0 : index
    %c0_14 = arith.constant 0 : index
    %16 = vector.load %arg10[%c0_13, %c0_14] : memref<4x1xf32, #tpu.memory_space<vmem>>, vector<4x1xf32>
    %17 = vector.broadcast %16 : vector<4x1xf32> to vector<4x128xf32>
    %18 = arith.addf %15, %17 : vector<4x128xf32>
    %c0_15 = arith.constant 0 : index
    %c0_16 = arith.constant 0 : index
    %19 = vector.load %arg4[%c0_15, %c0_16] : memref<4x128xf32, #tpu.memory_space<vmem>>, vector<4x128xf32>
    %20 = arith.mulf %18, %19 : vector<4x128xf32>
    %c0_17 = arith.constant 0 : index
    %c0_18 = arith.constant 0 : index
    %21 = vector.load %arg5[%c0_17, %c0_18] : memref<128x2xf32, #tpu.memory_space<vmem>>, vector<128x2xf32>
    %cst_19 = arith.constant dense<0.000000e+00> : vector<4x2xf32>
    %22 = tpu.matmul %20, %21, %cst_19 {dimension_numbers = #tpu.dot_dimension_numbers<[1], [0], [0], [1], [0, 0, 1, 1], [], []>} : vector<4x128xf32>, vector<128x2xf32>, vector<4x2xf32> -> vector<4x2xf32>
    %c0_20 = arith.constant 0 : index
    %c0_21 = arith.constant 0 : index
    %23 = vector.load %arg11[%c0_20, %c0_21] : memref<4x1xf32, #tpu.memory_space<vmem>>, vector<4x1xf32>
    %24 = vector.broadcast %23 : vector<4x1xf32> to vector<4x2xf32>
    %25 = arith.mulf %22, %24 : vector<4x2xf32>
    %c0_22 = arith.constant 0 : index
    %c0_23 = arith.constant 0 : index
    %26 = vector.load %arg12[%c0_22, %c0_23] : memref<4x1xf32, #tpu.memory_space<vmem>>, vector<4x1xf32>
    %27 = vector.broadcast %26 : vector<4x1xf32> to vector<4x2xf32>
    %28 = arith.addf %25, %27 : vector<4x2xf32>
    %29 = arith.negf %28 : vector<4x2xf32>
    %30 = math.exp %29 : vector<4x2xf32>
    %cst_24 = arith.constant 1.000000e+00 : f32
    %31 = vector.broadcast %cst_24 : f32 to vector<4x2xf32>
    %32 = arith.addf %31, %30 : vector<4x2xf32>
    %33 = arith.divf %31, %32 : vector<4x2xf32>
    %c0_25 = arith.constant 0 : index
    %c0_26 = arith.constant 0 : index
    %34 = vector.load %arg6[%c0_25, %c0_26] : memref<2x128xf32, #tpu.memory_space<vmem>>, vector<2x128xf32>
    %cst_27 = arith.constant dense<0.000000e+00> : vector<4x128xf32>
    %35 = tpu.matmul %33, %34, %cst_27 {dimension_numbers = #tpu.dot_dimension_numbers<[1], [0], [0], [1], [0, 0, 1, 1], [], []>} : vector<4x2xf32>, vector<2x128xf32>, vector<4x128xf32> -> vector<4x128xf32>
    %36 = arith.mulf %18, %35 : vector<4x128xf32>
    %cst_28 = arith.constant 0.000000e+00 : f32
    %37 = vector.broadcast %cst_28 : f32 to vector<4x128xf32>
    %38 = arith.maximumf %36, %37 : vector<4x128xf32>
    %c0_29 = arith.constant 0 : index
    %c0_30 = arith.constant 0 : index
    %39 = vector.load %arg13[%c0_29, %c0_30] : memref<4x128xf32, #tpu.memory_space<vmem>>, vector<4x128xf32>
    tpu.vector_store %arg13[%c0_29, %c0_30], %38 {strides = array<i32>} : memref<4x128xf32, #tpu.memory_space<vmem>>, vector<4x128xf32>,
    return
  }
  func.func @transform_0(%arg0: i32) -> (i32, i32) {
    %c0_i32 = arith.constant 0 : i32
    %c0_i32_0 = arith.constant 0 : i32
    return %c0_i32, %arg0 : i32, i32
  }
  func.func @transform_1(%arg0: i32) -> (i32, i32) {
    %c0_i32 = arith.constant 0 : i32
    %c0_i32_0 = arith.constant 0 : i32
    %c0_i32_1 = arith.constant 0 : i32
    return %c0_i32, %c0_i32_0 : i32, i32
  }
  func.func @transform_2(%arg0: i32) -> (i32, i32) {
    %c0_i32 = arith.constant 0 : i32
    %c0_i32_0 = arith.constant 0 : i32
    %c0_i32_1 = arith.constant 0 : i32
    return %c0_i32, %c0_i32_0 : i32, i32
  }
  func.func @transform_3(%arg0: i32) -> (i32, i32) {
    %c0_i32 = arith.constant 0 : i32
    %c0_i32_0 = arith.constant 0 : i32
    %c0_i32_1 = arith.constant 0 : i32
    return %c0_i32, %c0_i32_0 : i32, i32
  }
  func.func @transform_4(%arg0: i32) -> (i32, i32) {
    %c0_i32 = arith.constant 0 : i32
    %c0_i32_0 = arith.constant 0 : i32
    %c0_i32_1 = arith.constant 0 : i32
    return %c0_i32, %c0_i32_0 : i32, i32
  }
  func.func @transform_5(%arg0: i32) -> (i32, i32) {
    %c0_i32 = arith.constant 0 : i32
    %c0_i32_0 = arith.constant 0 : i32
    %c0_i32_1 = arith.constant 0 : i32
    return %c0_i32, %c0_i32_0 : i32, i32
  }
  func.func @transform_6(%arg0: i32) -> (i32, i32) {
    %c0_i32 = arith.constant 0 : i32
    %c0_i32_0 = arith.constant 0 : i32
    %c0_i32_1 = arith.constant 0 : i32
    return %c0_i32, %c0_i32_0 : i32, i32
  }
  func.func @transform_7(%arg0: i32) -> (i32, i32) {
    %c0_i32 = arith.constant 0 : i32
    %c0_i32_0 = arith.constant 0 : i32
    %c0_i32_1 = arith.constant 0 : i32
    return %c0_i32, %c0_i32_0 : i32, i32
  }
  func.func @transform_8(%arg0: i32) -> (i32, i32) {
    %c0_i32 = arith.constant 0 : i32
    %c0_i32_0 = arith.constant 0 : i32
    %c0_i32_1 = arith.constant 0 : i32
    return %c0_i32, %c0_i32_0 : i32, i32
  }
  func.func @transform_9(%arg0: i32) -> (i32, i32) {
    %c0_i32 = arith.constant 0 : i32
    %c0_i32_0 = arith.constant 0 : i32
    %c0_i32_1 = arith.constant 0 : i32
    return %c0_i32, %c0_i32_0 : i32, i32
  }
  func.func @transform_10(%arg0: i32) -> (i32, i32) {
    %c0_i32 = arith.constant 0 : i32
    %c0_i32_0 = arith.constant 0 : i32
    %c0_i32_1 = arith.constant 0 : i32
    return %c0_i32, %c0_i32_0 : i32, i32
  }
  func.func @transform_11(%arg0: i32) -> (i32, i32) {
    %c0_i32 = arith.constant 0 : i32
    %c0_i32_0 = arith.constant 0 : i32
    %c0_i32_1 = arith.constant 0 : i32
    return %c0_i32, %c0_i32_0 : i32, i32
  }
  func.func @transform_12(%arg0: i32) -> (i32, i32) {
    %c0_i32 = arith.constant 0 : i32
    %c0_i32_0 = arith.constant 0 : i32
    return %c0_i32, %arg0 : i32, i32
  }
}

</mosaic_0001>

<bundles_post_ra>
// kernel: tpu_custom_call.1
= control target key start
LH: loop header
LB: loop body
LE: loop exit
PB: predicated region body
PF: predicated region fallthrough
CT: control target
= control target key end

     0   :  { %vm56_vm0 = vcmask 1043456   ;;  %vm49_vm1 = vcmask 293888   ;;  %v586_v5 = vmov 0   ;;  %s787_s0 = inlined_call_operand.vmem [shape: f32[36,128], index: 0, kind: input, shape index: {}]   ;;  %s788_s1 = inlined_call_operand.vmem [shape: f32[16,36], index: 1, kind: input, shape index: {}]   ;;  %s789_s2 = inlined_call_operand.vmem [shape: f32[4,16], index: 2, kind: input, shape index: {}]   ;;  %s790_s3 = inlined_call_operand.vmem [shape: f32[4,128], index: 3, kind: input, shape index: {}]   ;;  %s791_s4 = inlined_call_operand.vmem [shape: f32[128,2], index: 4, kind: input, shape index: {}]   ;;  %s792_s5 = inlined_call_operand.vmem [shape: f32[2,128], index: 5, kind: input, shape index: {}]   ;;  %s793_s6 = inlined_call_operand.vmem [shape: f32[16,1], index: 6, kind: input, shape index: {}]   ;;  %s794_s7 = inlined_call_operand.vmem [shape: f32[16,1], index: 7, kind: input, shape index: {}]   ;;  %s795_s8 = inlined_call_operand.vmem [shape: f32[4,1], index: 8, kind: input, shape index: {}]   ;;  %s796_s9 = inlined_call_operand.vmem [shape: f32[4,1], index: 9, kind: input, shape index: {}]   ;;  %s797_s10 = inlined_call_operand.vmem [shape: f32[4,1], index: 10, kind: input, shape index: {}]   ;;  %s798_s11 = inlined_call_operand.vmem [shape: f32[4,1], index: 11, kind: input, shape index: {}]   ;;  %s799_s12 = inlined_call_operand.hbm [shape: f32[4,128], index: 12, kind: output, shape index: {}]  }
   0x1   :  { %v48_v0 = vld [vmem:[%s787_s0 + $0x20] sm:$0xf]  ;;  %v47_v1 = vld [vmem:[%s787_s0 + $0x18] sm:$0xff]  ;;  %v46_v3 = vld [vmem:[%s787_s0 + $0x10] sm:$0xff]  ;;  %558 = vset.pattern.permute.xlu0 %v586_v5  ;;  %559 = vset.pattern.permute.xlu1 %v586_v5 }
   0x2   :  { %494 = vmatprep.subr.msk.mxu0 %vm56_vm0, %v48_v0  ;;  %v42_v2 = vld [vmem:[%s788_s1] sm:$0xff]  ;;  %v136_v4 = vld [vmem:[%s793_s6 + $0x8] sm:$0xff] }
   0x3   :  { %495 = vmatpush3.msk.msra.mxu0 %vm56_vm0, %v48_v0  ;;  %504 = vmatprep.mubr.msk.f32.mxu0 %vm49_vm1, %v42_v2  ;;  %v150_v6 = vld [vmem:[%s794_s7 + $0x8] sm:$0xff]  ;;  %v135_v8 = vld [vmem:[%s793_s6] sm:$0xff] }
   0x4   :  { %496 = vmatprep.subr.mxu0 %v47_v1  ;;  %v45_v7 = vld [vmem:[%s787_s0 + $0x8] sm:$0xff]  ;;  %144 = vperm.xlu0 %558, %v136_v4  }
   0x5   :  { %497 = vmatpush3.msra.mxu0 %v47_v1 }
   0x6   :  { %498 = vmatprep.subr.mxu0 %v46_v3 }
   0x7   :  { %17 = vsyncpa [#allocation3], 0  ;;  %499 = vmatpush3.msra.mxu0 %v46_v3  ;;  %v44_v9 = vld [vmem:[%s787_s0] sm:$0xff]  ;;  %158 = vperm.xlu1 %559, %v150_v6   ;;  %v43_v11 = vld [vmem:[%s788_s1 + $0x8] sm:$0xff]  ;;  %v587_v16 = vmov 0.0   ;;  %vm588_vm2 = vmmov 0  }
   0x8   :  { %500 = vmatprep.subr.mxu0 %v45_v7  ;;  %v149_v10 = vld [vmem:[%s794_s7] sm:$0xff]  ;;  %139 = vperm.xlu0 %558, %v135_v8   ;;  %v271_v17 = vld [vmem:[%s791_s4 + $0x78] sm:$0xff]  ;;  %v270_v18 = vld [vmem:[%s791_s4 + $0x70] sm:$0xff]  ;;  %vm166_vm3 = vcmask 130048   ;;  %vm367_vm4 = vcmask 1041408   ;;  %vm363_vm5 = vcmask 15360  }
   0x9   :  { %501 = vmatpush3.msra.mxu0 %v45_v7  ;;  %v240_v12 = vld [vmem:[%s795_s8] sm:$0xf]  ;;  %514 = vmatprep.subr.mxu1 %v587_v16  ;;  %v269_v19 = vld [vmem:[%s791_s4 + $0x68] sm:$0xff]  ;;  %v267_v21 = vld [vmem:[%s791_s4 + $0x58] sm:$0xff] }
   0xa   :  { %502 = vmatprep.subr.mxu0 %v44_v9  ;;  %v247_v13 = vld [vmem:[%s796_s9] sm:$0xf]  ;;  %546 = vmatprep.mubr.msk.f32.mxu1 %vm588_vm2, %v587_v16  ;;  %v266_v22 = vld [vmem:[%s791_s4 + $0x50] sm:$0xff]  ;;  %v265_v23 = vld [vmem:[%s791_s4 + $0x48] sm:$0xff] }
   0xb   :  { %503 = vmatpush3.msra.mxu0 %v44_v9  ;;  %153 = vperm.xlu1 %559, %v149_v10   ;;  %v342_v14 = vld [vmem:[%s797_s10] sm:$0xf]  ;;  %v263_v25 = vld [vmem:[%s791_s4 + $0x38] sm:$0xff]  ;;  %v262_v26 = vld [vmem:[%s791_s4 + $0x30] sm:$0xff] }
   0xc   :  { %505 = vmatmul.mubr.msk.f32.vlgmr.msra.gmra.mxu0 %vm49_vm1, %v43_v11  ;;  %243 = vperm.xlu0 %558, %v240_v12   ;;  %v349_v15 = vld [vmem:[%s798_s11] sm:$0xf]  ;;  %v261_v27 = vld [vmem:[%s791_s4 + $0x28] sm:$0xff]  ;;  %v259_v42 = vld [vmem:[%s791_s4 + $0x18] sm:$0xff] }
   0xd   :  { %507 = vmatprep.subr.mxu0 %v587_v16  ;;  %511 = vmatprep.mubr.msk.f32.mxu0 %vm588_vm2, %v587_v16  ;;  %v268_v20 = vld [vmem:[%s791_s4 + $0x60] sm:$0xff]  ;;  %v258_v43 = vld [vmem:[%s791_s4 + $0x10] sm:$0xff]  ;;  %v257_v44 = vld [vmem:[%s791_s4 + $0x8] sm:$0xff] }
   0xe   :  { %515 = vmatpush3.msra.mxu1 %v271_v17  ;;  %v264_v24 = vld [vmem:[%s791_s4 + $0x40] sm:$0xff] }
   0xf   :  { %250 = vperm.xlu1 %559, %v247_v13   ;;  %516 = vmatprep.subr.mxu1 %v587_v16  ;;  %v260_v28 = vld [vmem:[%s791_s4 + $0x20] sm:$0xff] }
  0x10   :  { %345 = vperm.xlu0 %558, %v342_v14   ;;  %517 = vmatpush3.msra.mxu1 %v270_v18  ;;  %v165_v41 = vld [vmem:[%s789_s2] sm:$0xf] }
  0x11   :  { %518 = vmatprep.subr.mxu1 %v587_v16  ;;  %v256_v45 = vld [vmem:[%s791_s4] sm:$0xff] }
  0x12   :  { %519 = vmatpush3.msra.mxu1 %v269_v19  ;;  %v254_v51 = vld [vmem:[%s790_s3] sm:$0xf]  ;;  %s589_s3 = smov [#allocation2]  }
  0x13   :  { %352 = vperm.xlu1 %559, %v349_v15   ;;  %520 = vmatprep.subr.mxu1 %v587_v16  ;;  %v362_v54 = vld [vmem:[%s792_s5] sm:$0x3]  ;;  %s450_s4 = sshll.u32 %s589_s3, 4  ;;  %s451_s4 = int_to_ptr.vmem [resolvable:$true] %s450_s4 }
  0x14   :  { %521 = vmatpush3.msra.mxu1 %v268_v20  ;;  %s564_s5 = scalar_lea.vmem %s451_s4, 64  ;;  %p569_p1 = scmp.lt.s32.totalorder %s451_s4, %s451_s4 }
  0x15   :  { %522 = vmatprep.subr.mxu1 %v587_v16  ;;  %p565_p0 = scmp.ne.s32.totalorder %s451_s4, %s564_s5  ;;  %p570_p2 = scmp.lt.s32.totalorder %s564_s5, %s564_s5 }
  0x16   :  { %523 = vmatpush3.msra.mxu1 %v267_v21 }
  0x17   :  { %524 = vmatprep.subr.mxu1 %v587_v16  ;;  %p571_p3 = por %p570_p2, %p569_p1 }
  0x18   :  { %525 = vmatpush3.msra.mxu1 %v266_v22 }
  0x19   :  { %526 = vmatprep.subr.mxu1 %v587_v16  ;;  %p572_p4 = pnand %p571_p3, %p565_p0 }
  0x1a   :  { %527 = vmatpush3.msra.mxu1 %v265_v23 }
  0x1b   :  { %528 = vmatprep.subr.mxu1 %v587_v16 }
  0x1c   :  { %529 = vmatpush3.msra.mxu1 %v264_v24 }
  0x1d   :  { %530 = vmatprep.subr.mxu1 %v587_v16 }
  0x1e   :  { %531 = vmatpush3.msra.mxu1 %v263_v25 }
  0x1f   :  { %532 = vmatprep.subr.mxu1 %v587_v16 }
  0x20   :  { %533 = vmatpush3.msra.mxu1 %v262_v26 }
  0x21   :  { %534 = vmatprep.subr.mxu1 %v587_v16 }
  0x22   :  { %535 = vmatpush3.msra.mxu1 %v261_v27 }
  0x23   :  { %536 = vmatprep.subr.mxu1 %v587_v16 }
  0x24   :  { %537 = vmatpush3.msra.mxu1 %v260_v28 }
  0x25   :  { %538 = vmatprep.subr.mxu1 %v587_v16 }
  0x26   :  { %539 = vmatpush3.msra.mxu1 %v259_v42 }
  0x27   :  { %540 = vmatprep.subr.mxu1 %v587_v16 }
  0x28   :  { %541 = vmatpush3.msra.mxu1 %v258_v43 }
  0x29   :  { %542 = vmatprep.subr.mxu1 %v587_v16 }
  0x2a   :  { %543 = vmatpush3.msra.mxu1 %v257_v44 }
  0x2b   :  { %544 = vmatprep.subr.mxu1 %v587_v16 }
  0x2c   :  { %545 = vmatpush3.msra.mxu1 %v256_v45 }
  0x7f   :  { %v145_v29 = vpop.permute.xlu0 %144 }
  0x82   :  { %v159_v30 = vpop.permute.xlu1 %158 }
  0x83   :  { %v140_v33 = vpop.permute.xlu0 %139 }
  0x86   :  { %v154_v37 = vpop.permute.xlu1 %153 }
  0x87   :  { %v244_v46 = vpop.permute.xlu0 %243 }
  0x8a   :  { %v251_v49 = vpop.permute.xlu1 %250 }
  0x8b   :  { %v346_v55 = vpop.permute.xlu0 %345 }
  0x8e   :  { %v353_v58 = vpop.permute.xlu1 %352 }
  0xcc   :  { %v506_v31 = vpop.f32.mrf.mxu0 }
  0xcd   :  { %v148_v32 = vmul.f32 %v506_v31, %v145_v29 }
  0xce   :  { %v126_v34 = vpop.f32.mrf.mxu0 }
  0xcf   :  { %v162_v35 = vadd.f32 %v159_v30, %v148_v32  ;;  %v147_v36 = vmul.f32 %v140_v33, %v126_v34 }
  0xd1   :  { %v164_v38 = vmax.f32 %v162_v35, 0.0  ;;  %v161_v39 = vadd.f32 %v154_v37, %v147_v36 }
  0xd3   :  { %v163_v40 = vmax.f32 %v161_v39, 0.0  ;;  %508 = vmatpush3.msra.mxu0 %v164_v38 }
  0xd4   :  { %509 = vmatprep.subr.mxu0 %v587_v16 }
  0xd5   :  { %510 = vmatpush3.msra.mxu0 %v163_v40 }
  0xd6   :  { %512 = vmatmul.mubr.msk.f32.vlgmr.msra.gmra.mxu0 %vm166_vm3, %v165_v41  ;;  %549 = vmatprep.subr.mxu0 %v587_v16 }
  0xd7   :  { %551 = vmatprep.mubr.msk.f32.mxu0 %vm588_vm2, %v587_v16  ;;  %550 = vmatpush3.msk.msra.mxu0 %vm367_vm4, %v362_v54 }
 0x196   :  { %v236_v47 = vpop.f32.mrf.mxu0 }
 0x197   :  { %v246_v48 = vmul.f32 %v244_v46, %v236_v47 }
 0x198   :  { %v513_v50 = vpop.f32.mrf.mxu0 }
 0x199   :  { %v253_v52 = vadd.f32 %v251_v49, %v246_v48 }
 0x19b   :  { %v255_v53 = vmul.f32 %v254_v51, %v253_v52 }
 0x19d   :  { %547 = vmatmul.mubr.f32.vlgmr.msra.gmra.mxu1 %v255_v53 }
 0x25d   :  { %v338_v56 = vpop.f32.mrf.mxu1 }
 0x25e   :  { %v348_v57 = vmul.f32 %v346_v55, %v338_v56 }
 0x25f   :  { %v548_v59 = vpop.f32.mrf.mxu1 }
 0x260   :  { %v355_v60 = vadd.f32 %v353_v58, %v348_v57 }
 0x262   :  { %v462_v61 = vmul.f32 -1.442695, %v355_v60 }
 0x264   :  { %560 = vpow2.f32 %v462_v61 }
 0x271   :  { %v561_v62 = vpop.eup %560 }
 0x272   :  { %v359_v63 = vadd.f32 1.0, %v561_v62 }
 0x274   :  { %562 = vrcp.f32 %v359_v63 }
 0x281   :  { %v563_v0 = vpop.eup %562 }
 0x282   :  { %552 = vmatmul.mubr.msk.f32.vlgmr.msra.gmra.mxu0 %vm363_vm5, %v563_v0 }
 0x342   :  { %v437_v1 = vpop.f32.mrf.mxu0 }
 0x343   :  { %v441_v2 = vmul.f32 %v437_v1, %v253_v52 }
 0x344   :  { %v553_v3 = vpop.f32.mrf.mxu0 }
 0x345   :  { %v442_v4 = vmax.f32 %v441_v2, 0.0 }
 0x347   :  { %443 = vst [vmem:[#allocation2] sm:$0xf] %v442_v4 }
 0x348   :  { %575 = shalt.err (!%p572_p4)
}
 0x349   :  { %453 = dma.vmem_to_hbm [thread:$0]  %s451_s4, 64, %s799_s12, [#allocation3]  }
 0x34a   :  { %584 = dma.done.wait [#allocation3], 64  }
 0x34b   :  { %585 = vsyncadd [#allocation3], 4294967232 }
 0x34c   :  { %457 = vsyncpa [#allocation3], 1 }

</bundles_post_ra>
